<compile_context>
chip_gen: v5e
topology: v5e:2x2
jax: 0.10.0
libtpu: 0.0.40
codegen_flags: <defaults>
</compile_context>

<pallas_src>
import functools

import jax
import jax.numpy as jnp
from jax.experimental import pallas as pl
from jax.experimental.pallas import tpu as pltpu


def _round_up(n, m):
    return ((n + m - 1) // m) * m


def _vae_kernel(
    x_ref, eps_ref,
    w1_ref, b1_ref,
    w2_ref, b2_ref,      # fused mu|logvar projection
    w3_ref, b3_ref,
    w4_ref, b4_ref,
    recon_ref, mulogvar_ref,
    *, latent_pad, matmul_dtype,
):
    def mm(a, w_ref):
        # MXU matmul: cast activations to the MXU dtype, accumulate in f32.
        return jnp.dot(a.astype(matmul_dtype), w_ref[...],
                       preferred_element_type=jnp.float32)

    x = x_ref[...]

    # encode: h1 = relu(x @ W1 + b1)
    h1 = jnp.maximum(mm(x, w1_ref) + b1_ref[...], 0.0)

    # fused mu|logvar projection: one matmul, lane-dense 2*latent_pad output.
    mulogvar = mm(h1, w2_ref) + b2_ref[...]
    mu = mulogvar[:, :latent_pad]
    logvar = mulogvar[:, latent_pad:]

    # reparameterize: z = mu + eps * exp(0.5 * logvar)   (f32 elementwise, EUP exp)
    z = mu + eps_ref[...] * jnp.exp(0.5 * logvar)

    # decode: h3 = relu(z @ W3 + b3); recon = sigmoid(h3 @ W4 + b4)
    h3 = jnp.maximum(mm(z, w3_ref) + b3_ref[...], 0.0)
    recon = jax.nn.sigmoid(mm(h3, w4_ref) + b4_ref[...])

    recon_ref[...] = recon.astype(recon_ref.dtype)
    mulogvar_ref[...] = mulogvar.astype(mulogvar_ref.dtype)


def prepare_params(params, matmul_dtype=jnp.bfloat16):
    """One-time prep: zero-pad feature dims to multiples of 128 lanes, fuse the
    mu/logvar weights into one [hidden_pad, 2*latent_pad] matrix, and cast the
    matmul weights to the MXU dtype (biases stay f32, added post-accumulation)."""
    w1, b1 = params["w1"], params["b1"]
    w21, b21 = params["w21"], params["b21"]
    w22, b22 = params["w22"], params["b22"]
    w3, b3 = params["w3"], params["b3"]
    w4, b4 = params["w4"], params["b4"]

    input_dim, hidden_dim = w1.shape
    latent_dim = w21.shape[1]

    in_p = _round_up(input_dim, 128)
    hid_p = _round_up(hidden_dim, 128)
    lat_p = _round_up(latent_dim, 128)

    def pad_w(w, rows, cols):
        return jnp.pad(w, ((0, rows - w.shape[0]), (0, cols - w.shape[1])))

    def pad_b(b, cols):
        return jnp.pad(b, ((0, 0), (0, cols - b.shape[1])))

    w2_fused = jnp.concatenate(
        [pad_w(w21, hid_p, lat_p), pad_w(w22, hid_p, lat_p)], axis=1)
    b2_fused = jnp.concatenate([pad_b(b21, lat_p), pad_b(b22, lat_p)], axis=1)

    prep = dict(
        w1=pad_w(w1, in_p, hid_p).astype(matmul_dtype),
        b1=pad_b(b1, hid_p).astype(jnp.float32),
        w2=w2_fused.astype(matmul_dtype),
        b2=b2_fused.astype(jnp.float32),
        w3=pad_w(w3, lat_p, hid_p).astype(matmul_dtype),
        b3=pad_b(b3, hid_p).astype(jnp.float32),
        w4=pad_w(w4, hid_p, in_p).astype(matmul_dtype),
        b4=pad_b(b4, in_p).astype(jnp.float32),
    )
    dims = dict(input_dim=input_dim, hidden_dim=hidden_dim, latent_dim=latent_dim,
                in_p=in_p, hid_p=hid_p, lat_p=lat_p)
    return prep, dims


def vae_forward_pallas(x, eps, prep, dims, *, tile_b=256):
    """Full VAE forward. Batch grid with resident weights; returns (recon, mu, logvar)."""
    B = x.shape[0]
    in_p, lat_p = dims["in_p"], dims["lat_p"]
    input_dim, latent_dim = dims["input_dim"], dims["latent_dim"]

    tile_b = max(8, min(tile_b, _round_up(B, 8)))
    b_pad = _round_up(B, tile_b)

    # Zero-pad batch and feature dims (eps padded with zeros so padded z lanes stay 0).
    x_p = jnp.pad(x.astype(jnp.float32), ((0, b_pad - B), (0, in_p - x.shape[1])))
    eps_p = jnp.pad(eps.astype(jnp.float32), ((0, b_pad - B), (0, lat_p - eps.shape[1])))

    grid = (b_pad // tile_b,)

    def act_spec(d):
        return pl.BlockSpec((tile_b, d), lambda i: (i, 0))

    def resident_spec(shape):
        return pl.BlockSpec(shape, lambda i: (0, 0))

    in_specs = [
        act_spec(in_p),                      # x tile
        act_spec(lat_p),                     # eps tile
        resident_spec(prep["w1"].shape), resident_spec(prep["b1"].shape),
        resident_spec(prep["w2"].shape), resident_spec(prep["b2"].shape),
        resident_spec(prep["w3"].shape), resident_spec(prep["b3"].shape),
        resident_spec(prep["w4"].shape), resident_spec(prep["b4"].shape),
    ]
    out_specs = (
        act_spec(in_p),          # recon (lane-dense, padded)
        act_spec(2 * lat_p),     # mu|logvar slab (lane-dense)
    )
    out_shapes = (
        jax.ShapeDtypeStruct((b_pad, in_p), jnp.float32),
        jax.ShapeDtypeStruct((b_pad, 2 * lat_p), jnp.float32),
    )

    # VMEM budget: resident weights (worst case x2) + double-buffered activation tiles,
    # with headroom; capped comfortably under v7x's 64 MiB physical VMEM.
    def nbytes(a):
        return int(a.size) * a.dtype.itemsize
    weight_bytes = sum(nbytes(prep[k]) for k in ("w1", "b1", "w2", "b2",
                                                 "w3", "b3", "w4", "b4"))
    act_bytes = 4 * tile_b * (in_p + lat_p + in_p + 2 * lat_p)
    vmem_est = 2 * weight_bytes + 2 * act_bytes
    vmem_limit = int(min(48 * 1024 * 1024, max(2 * vmem_est, 16 * 1024 * 1024)))

    kernel = functools.partial(_vae_kernel, latent_pad=lat_p,
                               matmul_dtype=prep["w1"].dtype)

    recon_p, mulogvar_p = pl.pallas_call(
        kernel,
        out_shape=out_shapes,
        grid=grid,
        in_specs=in_specs,
        out_specs=out_specs,
        compiler_params=pltpu.CompilerParams(
            dimension_semantics=("parallel",),   # v7x: shard batch tiles across both TCs
            vmem_limit_bytes=vmem_limit,
        ),
    )(x_p, eps_p,
      prep["w1"], prep["b1"], prep["w2"], prep["b2"],
      prep["w3"], prep["b3"], prep["w4"], prep["b4"])

    recon = recon_p[:B, :input_dim]
    mu = mulogvar_p[:B, :latent_dim]
    logvar = mulogvar_p[:B, lat_p:lat_p + latent_dim]
    return recon, mu, logvar


def init_params(key, input_dim, hidden_dim, latent_dim):
    """Deterministic synthetic init. Weights stored as [in, out] (already transposed)."""
    def linear(k, fan_in, fan_out):
        kw, kb = jax.random.split(k)
        limit = 1.0 / jnp.sqrt(fan_in)
        w = jax.random.uniform(kw, (fan_in, fan_out), jnp.float32, -limit, limit)
        b = jax.random.uniform(kb, (1, fan_out), jnp.float32, -limit, limit)
        return w, b

    k1, k2, k3, k4, k5 = jax.random.split(key, 5)
    w1, b1 = linear(k1, input_dim, hidden_dim)
    w21, b21 = linear(k2, hidden_dim, latent_dim)
    w22, b22 = linear(k3, hidden_dim, latent_dim)
    w3, b3 = linear(k4, latent_dim, hidden_dim)
    w4, b4 = linear(k5, hidden_dim, input_dim)
    return dict(w1=w1, b1=b1, w21=w21, b21=b21, w22=w22, b22=b22,
                w3=w3, b3=b3, w4=w4, b4=b4)


def vae_forward_ref(x, eps, p):
    """Pure-JAX f32 reference (mirrors the PyTorch forward exactly)."""
    h1 = jnp.maximum(x @ p["w1"] + p["b1"], 0.0)
    mu = h1 @ p["w21"] + p["b21"]
    logvar = h1 @ p["w22"] + p["b22"]
    z = mu + eps * jnp.exp(0.5 * logvar)
    h3 = jnp.maximum(z @ p["w3"] + p["b3"], 0.0)
    recon = jax.nn.sigmoid(h3 @ p["w4"] + p["b4"])
    return recon, mu, logvar


if __name__ == "__main__":
    # Small shapes consistent with the module's Linear stack (toy sizes; at this
    # scale the kernel is launch-latency-bound — the structure above pays off at
    # realistic B / feature dims).
    batch = 8
    input_dim = 64
    hidden_dim = 32
    latent_dim = 16

    key = jax.random.PRNGKey(0)
    k_params, k_x, k_eps = jax.random.split(key, 3)

    params = init_params(k_params, input_dim, hidden_dim, latent_dim)
    x = jax.random.uniform(k_x, (batch, input_dim), jnp.float32)
    eps = jax.random.normal(k_eps, (batch, latent_dim), jnp.float32)

    recon_r, mu_r, logvar_r = vae_forward_ref(x, eps, params)

    # 1) f32 matmul path: tight correctness check against the PyTorch-equivalent reference.
    prep32, dims32 = prepare_params(params, matmul_dtype=jnp.float32)
    recon, mu, logvar = vae_forward_pallas(x, eps, prep32, dims32, tile_b=256)
    jax.block_until_ready((recon, mu, logvar))
    assert jnp.allclose(recon, recon_r, atol=1e-5, rtol=1e-5)
    assert jnp.allclose(mu, mu_r, atol=1e-5, rtol=1e-5)
    assert jnp.allclose(logvar, logvar_r, atol=1e-5, rtol=1e-5)

    # 2) bf16 matmul path (v6e/v7x MXU dtype): looser tolerances, elementwise math stays f32.
    prep16, dims16 = prepare_params(params, matmul_dtype=jnp.bfloat16)
    recon_b, mu_b, logvar_b = vae_forward_pallas(x, eps, prep16, dims16, tile_b=256)
    jax.block_until_ready((recon_b, mu_b, logvar_b))
    assert jnp.allclose(recon_b, recon_r, atol=5e-2, rtol=5e-2)
    assert jnp.allclose(mu_b, mu_r, atol=5e-2, rtol=5e-2)
    assert jnp.allclose(logvar_b, logvar_r, atol=5e-2, rtol=5e-2)

    print("KERNEL_OK")
</pallas_src>

<mosaic_0001>
module attributes {stable_mosaic.version = 11 : i64} {
  func.func @_vae_kernel(%arg0: i32, %arg1: memref<8x128xf32, #tpu.memory_space<vmem>>, %arg2: memref<8x128xf32, #tpu.memory_space<vmem>>, %arg3: memref<128x128xf32, #tpu.memory_space<vmem>>, %arg4: memref<1x128xf32, #tpu.memory_space<vmem>>, %arg5: memref<128x256xf32, #tpu.memory_space<vmem>>, %arg6: memref<1x256xf32, #tpu.memory_space<vmem>>, %arg7: memref<128x128xf32, #tpu.memory_space<vmem>>, %arg8: memref<1x128xf32, #tpu.memory_space<vmem>>, %arg9: memref<128x128xf32, #tpu.memory_space<vmem>>, %arg10: memref<1x128xf32, #tpu.memory_space<vmem>>, %arg11: memref<8x128xf32, #tpu.memory_space<vmem>>, %arg12: memref<8x256xf32, #tpu.memory_space<vmem>>) attributes {dimension_semantics = [#tpu.dimension_semantics<parallel>], iteration_bounds = array<i64: 1>, scalar_prefetch = 0 : i64, scratch_operands = 0 : i64, tpu.core_type = #tpu.core_type<tc>, window_params = [{transform_indices = @transform_0, window_bounds = array<i64: 8, 128>}, {transform_indices = @transform_1, window_bounds = array<i64: 8, 128>}, {pipeline_mode = #tpu.pipeline_mode<synchronous>, transform_indices = @transform_2, window_bounds = array<i64: 128, 128>}, {pipeline_mode = #tpu.pipeline_mode<synchronous>, transform_indices = @transform_3, window_bounds = array<i64: 1, 128>}, {pipeline_mode = #tpu.pipeline_mode<synchronous>, transform_indices = @transform_4, window_bounds = array<i64: 128, 256>}, {pipeline_mode = #tpu.pipeline_mode<synchronous>, transform_indices = @transform_5, window_bounds = array<i64: 1, 256>}, {pipeline_mode = #tpu.pipeline_mode<synchronous>, transform_indices = @transform_6, window_bounds = array<i64: 128, 128>}, {pipeline_mode = #tpu.pipeline_mode<synchronous>, transform_indices = @transform_7, window_bounds = array<i64: 1, 128>}, {pipeline_mode = #tpu.pipeline_mode<synchronous>, transform_indices = @transform_8, window_bounds = array<i64: 128, 128>}, {pipeline_mode = #tpu.pipeline_mode<synchronous>, transform_indices = @transform_9, window_bounds = array<i64: 1, 128>}, {transform_indices = @transform_10, window_bounds = array<i64: 8, 128>}, {transform_indices = @transform_11, window_bounds = array<i64: 8, 256>}]} {
    %c0 = arith.constant 0 : index
    %c0_0 = arith.constant 0 : index
    %0 = vector.load %arg1[%c0, %c0_0] : memref<8x128xf32, #tpu.memory_space<vmem>>, vector<8x128xf32>
    %c0_1 = arith.constant 0 : index
    %c0_2 = arith.constant 0 : index
    %1 = vector.load %arg3[%c0_1, %c0_2] : memref<128x128xf32, #tpu.memory_space<vmem>>, vector<128x128xf32>
    %cst = arith.constant dense<0.000000e+00> : vector<8x128xf32>
    %2 = tpu.matmul %0, %1, %cst {dimension_numbers = #tpu.dot_dimension_numbers<[1], [0], [0], [1], [0, 0, 1, 1], [], []>} : vector<8x128xf32>, vector<128x128xf32>, vector<8x128xf32> -> vector<8x128xf32>
    %c0_3 = arith.constant 0 : index
    %c0_4 = arith.constant 0 : index
    %3 = vector.load %arg4[%c0_3, %c0_4] : memref<1x128xf32, #tpu.memory_space<vmem>>, vector<1x128xf32>
    %4 = vector.broadcast %3 : vector<1x128xf32> to vector<8x128xf32>
    %5 = arith.addf %2, %4 : vector<8x128xf32>
    %cst_5 = arith.constant 0.000000e+00 : f32
    %6 = vector.broadcast %cst_5 : f32 to vector<8x128xf32>
    %7 = arith.maximumf %5, %6 : vector<8x128xf32>
    %c0_6 = arith.constant 0 : index
    %c0_7 = arith.constant 0 : index
    %8 = vector.load %arg5[%c0_6, %c0_7] : memref<128x256xf32, #tpu.memory_space<vmem>>, vector<128x256xf32>
    %cst_8 = arith.constant dense<0.000000e+00> : vector<8x256xf32>
    %9 = tpu.matmul %7, %8, %cst_8 {dimension_numbers = #tpu.dot_dimension_numbers<[1], [0], [0], [1], [0, 0, 1, 1], [], []>} : vector<8x128xf32>, vector<128x256xf32>, vector<8x256xf32> -> vector<8x256xf32>
    %c0_9 = arith.constant 0 : index
    %c0_10 = arith.constant 0 : index
    %10 = vector.load %arg6[%c0_9, %c0_10] : memref<1x256xf32, #tpu.memory_space<vmem>>, vector<1x256xf32>
    %11 = vector.broadcast %10 : vector<1x256xf32> to vector<8x256xf32>
    %12 = arith.addf %9, %11 : vector<8x256xf32>
    %13 = vector.extract_strided_slice %12 {offsets = [0, 0], sizes = [8, 128], strides = [1, 1]} : vector<8x256xf32> to vector<8x128xf32>
    %14 = vector.extract_strided_slice %12 {offsets = [0, 128], sizes = [8, 128], strides = [1, 1]} : vector<8x256xf32> to vector<8x128xf32>
    %c0_11 = arith.constant 0 : index
    %c0_12 = arith.constant 0 : index
    %15 = vector.load %arg2[%c0_11, %c0_12] : memref<8x128xf32, #tpu.memory_space<vmem>>, vector<8x128xf32>
    %cst_13 = arith.constant 5.000000e-01 : f32
    %16 = vector.broadcast %cst_13 : f32 to vector<8x128xf32>
    %17 = arith.mulf %16, %14 : vector<8x128xf32>
    %18 = math.exp %17 : vector<8x128xf32>
    %19 = arith.mulf %15, %18 : vector<8x128xf32>
    %20 = arith.addf %13, %19 : vector<8x128xf32>
    %c0_14 = arith.constant 0 : index
    %c0_15 = arith.constant 0 : index
    %21 = vector.load %arg7[%c0_14, %c0_15] : memref<128x128xf32, #tpu.memory_space<vmem>>, vector<128x128xf32>
    %cst_16 = arith.constant dense<0.000000e+00> : vector<8x128xf32>
    %22 = tpu.matmul %20, %21, %cst_16 {dimension_numbers = #tpu.dot_dimension_numbers<[1], [0], [0], [1], [0, 0, 1, 1], [], []>} : vector<8x128xf32>, vector<128x128xf32>, vector<8x128xf32> -> vector<8x128xf32>
    %c0_17 = arith.constant 0 : index
    %c0_18 = arith.constant 0 : index
    %23 = vector.load %arg8[%c0_17, %c0_18] : memref<1x128xf32, #tpu.memory_space<vmem>>, vector<1x128xf32>
    %24 = vector.broadcast %23 : vector<1x128xf32> to vector<8x128xf32>
    %25 = arith.addf %22, %24 : vector<8x128xf32>
    %cst_19 = arith.constant 0.000000e+00 : f32
    %26 = vector.broadcast %cst_19 : f32 to vector<8x128xf32>
    %27 = arith.maximumf %25, %26 : vector<8x128xf32>
    %c0_20 = arith.constant 0 : index
    %c0_21 = arith.constant 0 : index
    %28 = vector.load %arg9[%c0_20, %c0_21] : memref<128x128xf32, #tpu.memory_space<vmem>>, vector<128x128xf32>
    %cst_22 = arith.constant dense<0.000000e+00> : vector<8x128xf32>
    %29 = tpu.matmul %27, %28, %cst_22 {dimension_numbers = #tpu.dot_dimension_numbers<[1], [0], [0], [1], [0, 0, 1, 1], [], []>} : vector<8x128xf32>, vector<128x128xf32>, vector<8x128xf32> -> vector<8x128xf32>
    %c0_23 = arith.constant 0 : index
    %c0_24 = arith.constant 0 : index
    %30 = vector.load %arg10[%c0_23, %c0_24] : memref<1x128xf32, #tpu.memory_space<vmem>>, vector<1x128xf32>
    %31 = vector.broadcast %30 : vector<1x128xf32> to vector<8x128xf32>
    %32 = arith.addf %29, %31 : vector<8x128xf32>
    %33 = arith.negf %32 : vector<8x128xf32>
    %34 = math.exp %33 : vector<8x128xf32>
    %cst_25 = arith.constant 1.000000e+00 : f32
    %35 = vector.broadcast %cst_25 : f32 to vector<8x128xf32>
    %36 = arith.addf %35, %34 : vector<8x128xf32>
    %37 = arith.divf %35, %36 : vector<8x128xf32>
    %c0_26 = arith.constant 0 : index
    %c0_27 = arith.constant 0 : index
    %38 = vector.load %arg11[%c0_26, %c0_27] : memref<8x128xf32, #tpu.memory_space<vmem>>, vector<8x128xf32>
    tpu.vector_store %arg11[%c0_26, %c0_27], %37 {strides = array<i32>} : memref<8x128xf32, #tpu.memory_space<vmem>>, vector<8x128xf32>,
    %c0_28 = arith.constant 0 : index
    %c0_29 = arith.constant 0 : index
    %39 = vector.load %arg12[%c0_28, %c0_29] : memref<8x256xf32, #tpu.memory_space<vmem>>, vector<8x256xf32>
    tpu.vector_store %arg12[%c0_28, %c0_29], %12 {strides = array<i32>} : memref<8x256xf32, #tpu.memory_space<vmem>>, vector<8x256xf32>,
    return
  }
  func.func @transform_0(%arg0: i32) -> (i32, i32) {
    %c0_i32 = arith.constant 0 : i32
    %c0_i32_0 = arith.constant 0 : i32
    return %arg0, %c0_i32 : i32, i32
  }
  func.func @transform_1(%arg0: i32) -> (i32, i32) {
    %c0_i32 = arith.constant 0 : i32
    %c0_i32_0 = arith.constant 0 : i32
    return %arg0, %c0_i32 : i32, i32
  }
  func.func @transform_2(%arg0: i32) -> (i32, i32) {
    %c0_i32 = arith.constant 0 : i32
    %c0_i32_0 = arith.constant 0 : i32
    %c0_i32_1 = arith.constant 0 : i32
    return %c0_i32, %c0_i32_0 : i32, i32
  }
  func.func @transform_3(%arg0: i32) -> (i32, i32) {
    %c0_i32 = arith.constant 0 : i32
    %c0_i32_0 = arith.constant 0 : i32
    %c0_i32_1 = arith.constant 0 : i32
    return %c0_i32, %c0_i32_0 : i32, i32
  }
  func.func @transform_4(%arg0: i32) -> (i32, i32) {
    %c0_i32 = arith.constant 0 : i32
    %c0_i32_0 = arith.constant 0 : i32
    %c0_i32_1 = arith.constant 0 : i32
    return %c0_i32, %c0_i32_0 : i32, i32
  }
  func.func @transform_5(%arg0: i32) -> (i32, i32) {
    %c0_i32 = arith.constant 0 : i32
    %c0_i32_0 = arith.constant 0 : i32
    %c0_i32_1 = arith.constant 0 : i32
    return %c0_i32, %c0_i32_0 : i32, i32
  }
  func.func @transform_6(%arg0: i32) -> (i32, i32) {
    %c0_i32 = arith.constant 0 : i32
    %c0_i32_0 = arith.constant 0 : i32
    %c0_i32_1 = arith.constant 0 : i32
    return %c0_i32, %c0_i32_0 : i32, i32
  }
  func.func @transform_7(%arg0: i32) -> (i32, i32) {
    %c0_i32 = arith.constant 0 : i32
    %c0_i32_0 = arith.constant 0 : i32
    %c0_i32_1 = arith.constant 0 : i32
    return %c0_i32, %c0_i32_0 : i32, i32
  }
  func.func @transform_8(%arg0: i32) -> (i32, i32) {
    %c0_i32 = arith.constant 0 : i32
    %c0_i32_0 = arith.constant 0 : i32
    %c0_i32_1 = arith.constant 0 : i32
    return %c0_i32, %c0_i32_0 : i32, i32
  }
  func.func @transform_9(%arg0: i32) -> (i32, i32) {
    %c0_i32 = arith.constant 0 : i32
    %c0_i32_0 = arith.constant 0 : i32
    %c0_i32_1 = arith.constant 0 : i32
    return %c0_i32, %c0_i32_0 : i32, i32
  }
  func.func @transform_10(%arg0: i32) -> (i32, i32) {
    %c0_i32 = arith.constant 0 : i32
    %c0_i32_0 = arith.constant 0 : i32
    return %arg0, %c0_i32 : i32, i32
  }
  func.func @transform_11(%arg0: i32) -> (i32, i32) {
    %c0_i32 = arith.constant 0 : i32
    %c0_i32_0 = arith.constant 0 : i32
    return %arg0, %c0_i32 : i32, i32
  }
}

</mosaic_0001>

<bundles_post_ra>
// kernel: tpu_custom_call.1
= control target key start
LH: loop header
LB: loop body
LE: loop exit
PB: predicated region body
PF: predicated region fallthrough
CT: control target
= control target key end

     0   :  { %17 = vsyncpa [#allocation3], 0  ;;  %s728_s0 = inlined_call_operand.hbm [shape: f32[8,128], index: 0, kind: input, shape index: {}]   ;;  %s729_s1 = inlined_call_operand.hbm [shape: f32[8,128], index: 1, kind: input, shape index: {}]   ;;  %s730_s2 = inlined_call_operand.hbm [shape: f32[128,128], index: 2, kind: input, shape index: {}]   ;;  %s731_s3 = inlined_call_operand.vmem [shape: f32[1,128], index: 3, kind: input, shape index: {}]   ;;  %s732_s4 = inlined_call_operand.hbm [shape: f32[128,256], index: 4, kind: input, shape index: {}]   ;;  %s733_s5 = inlined_call_operand.vmem [shape: f32[1,256], index: 5, kind: input, shape index: {}]   ;;  %s734_s6 = inlined_call_operand.hbm [shape: f32[128,128], index: 6, kind: input, shape index: {}]   ;;  %s735_s7 = inlined_call_operand.vmem [shape: f32[1,128], index: 7, kind: input, shape index: {}]   ;;  %s736_s8 = inlined_call_operand.hbm [shape: f32[128,128], index: 8, kind: input, shape index: {}]   ;;  %s737_s9 = inlined_call_operand.vmem [shape: f32[1,128], index: 9, kind: input, shape index: {}]   ;;  %s738_s10 = inlined_call_operand.hbm [shape: f32[8,128], index: 10, kind: output, shape index: {0}]   ;;  %s739_s11 = inlined_call_operand.hbm [shape: f32[8,256], index: 11, kind: output, shape index: {1}]  }
   0x1   :  { %18 = vsyncpa [#allocation6], 0 }
   0x2   :  { %19 = vsyncpa [#allocation9], 0 }
   0x3   :  { %20 = vsyncpa [#allocation12], 0 }
   0x4   :  { %21 = vsyncpa [#allocation4], 0  ;;  %s39_s19 = sshll.u32 %s729_s1, 4  ;;  %s40_s19 = int_to_ptr.hbm [resolvable:$true] %s39_s19 }
   0x5   :  { %22 = vsyncpa [#allocation15], 0  ;;  %s620_s20 = smov [#allocation5]   ;;  %s64_s24 = sshll.u32 %s732_s4, 4  ;;  %s65_s24 = int_to_ptr.hbm [resolvable:$true] %s64_s24 }
   0x6   :  { %s41_s21 = sshll.u32 %s620_s20, 4  ;;  %s621_s25 = smov [#allocation8]   ;;  %s42_s21 = int_to_ptr.vmem [resolvable:$true] %s41_s21 }
   0x7   :  { %44 = dma.hbm_to_vmem [thread:$0]  %s40_s19, 128, %s42_s21, [#allocation6]  }
   0x8   :  { %s66_s26 = sshll.u32 %s621_s25, 4  ;;  %s622_s27 = smov 256   ;;  %s67_s26 = int_to_ptr.vmem [resolvable:$true] %s66_s26 }
   0x9   :  { %s623_s28 = smov 16   ;;  %s28_s1 = sshll.u32 %s728_s0, 4  ;;  %s29_s1 = int_to_ptr.hbm [resolvable:$true] %s28_s1 }
   0xa   :  { %72 = dma.hbm_to_vmem [thread:$0]  %s65_s24, 4096, %s67_s26, [#allocation9], %s622_s27, %s622_s27, %s623_s28  }
   0xb   :  { %s624_s12 = smov [#allocation2]   ;;  %s49_s4 = sshll.u32 %s730_s2, 4  ;;  %s50_s4 = int_to_ptr.hbm [resolvable:$true] %s49_s4 }
   0xc   :  { %s30_s13 = sshll.u32 %s624_s12, 4  ;;  %s625_s16 = smov [#allocation7]   ;;  %s31_s13 = int_to_ptr.vmem [resolvable:$true] %s30_s13 }
   0xd   :  { %33 = dma.hbm_to_vmem [thread:$0]  %s29_s1, 128, %s31_s13, [#allocation3]  }
   0xe   :  { %s51_s17 = sshll.u32 %s625_s16, 4  ;;  %s626_s18 = smov 128   ;;  %s52_s17 = int_to_ptr.vmem [resolvable:$true] %s51_s17 }
   0xf   :  { %s627_s19 = smov 8   ;;  %s79_s0 = sshll.u32 %s734_s6, 4  ;;  %s80_s0 = int_to_ptr.hbm [resolvable:$true] %s79_s0 }
  0x10   :  { %57 = dma.hbm_to_vmem [thread:$0]  %s50_s4, 2048, %s52_s17, [#allocation6], %s626_s18, %s626_s18, %s627_s19  }
  0x11   :  { %s628_s22 = smov [#allocation10]   ;;  %s94_s2 = sshll.u32 %s736_s8, 4  ;;  %s95_s2 = int_to_ptr.hbm [resolvable:$true] %s94_s2 }
  0x12   :  { %s81_s23 = sshll.u32 %s628_s22, 4  ;;  %s629_s26 = smov [#allocation11]   ;;  %s82_s23 = int_to_ptr.vmem [resolvable:$true] %s81_s23 }
  0x13   :  { %87 = dma.hbm_to_vmem [thread:$0]  %s80_s0, 2048, %s82_s23, [#allocation9], %s626_s18, %s626_s18, %s627_s19  }
  0x14   :  { %s96_s27 = sshll.u32 %s629_s26, 4  ;;  %s97_s27 = int_to_ptr.vmem [resolvable:$true] %s96_s27 }
  0x15   :  { %102 = dma.hbm_to_vmem [thread:$0]  %s95_s2, 2048, %s97_s27, [#allocation12], %s626_s18, %s626_s18, %s627_s19  }
  0x16   :  { %608 = dma.done.wait [#allocation3], 128  }
  0x17   :  { %609 = vsyncadd [#allocation3], 4294967168 }
  0x18   :  { %610 = dma.done.wait [#allocation6], 2176  }
  0x19   :  { %611 = vsyncadd [#allocation6], 4294965120 }
  0x1a   :  { %612 = dma.done.wait [#allocation9], 6144  }
  0x1b   :  { %613 = vsyncadd [#allocation9], 4294961152 }
  0x1c   :  { %614 = dma.done.wait [#allocation12], 2048  }
  0x1d   :  { %615 = vsyncadd [#allocation12], 4294965248  ;;  %v145_v0 = vld [vmem:[#allocation7 + $0x78] sm:$0xff]  ;;  %v144_v1 = vld [vmem:[#allocation7 + $0x70] sm:$0xff]  ;;  %s630_s30 = smov [#allocation14]   ;;  %s376_s14 = sshll.u32 %s739_s11, 4  ;;  %s377_s14 = int_to_ptr.hbm [resolvable:$true] %s376_s14 }
  0x1e   :  { %150 = vmatpush.msra.mxu0 %v145_v0  ;;  %v143_v2 = vld [vmem:[#allocation7 + $0x68] sm:$0xff]  ;;  %v142_v3 = vld [vmem:[#allocation7 + $0x60] sm:$0xff]  ;;  %v141_v4 = vld [vmem:[#allocation7 + $0x58] sm:$0xff]  ;;  %s374_s1 = sshll.u32 %s630_s30, 4  ;;  %s375_s1 = int_to_ptr.vmem [resolvable:$true] %s374_s1 }
  0x1f   :  { %v201_v5 = vld [vmem:[#allocation8 + $0xf0] sm:$0xff]  ;;  %v202_v6 = vld [vmem:[#allocation8 + $0xf8] sm:$0xff]  ;;  %v199_v7 = vld [vmem:[#allocation8 + $0xe0] sm:$0xff] }
  0x20   :  { %151 = vmatpush.msra.mxu0 %v144_v1  ;;  %209 = vmatpush.msra.mxu1 %v201_v5  ;;  %v200_v8 = vld [vmem:[#allocation8 + $0xe8] sm:$0xff]  ;;  %v197_v9 = vld [vmem:[#allocation8 + $0xd0] sm:$0xff]  ;;  %v198_v11 = vld [vmem:[#allocation8 + $0xd8] sm:$0xff] }
  0x21   :  { %229 = vmatpush.msra.mxu2 %v202_v6  ;;  %v140_v10 = vld [vmem:[#allocation7 + $0x50] sm:$0xff]  ;;  %v195_v12 = vld [vmem:[#allocation8 + $0xc0] sm:$0xff]  ;;  %v139_v13 = vld [vmem:[#allocation7 + $0x48] sm:$0xff] }
  0x22   :  { %152 = vmatpush.msra.mxu0 %v143_v2  ;;  %210 = vmatpush.msra.mxu1 %v199_v7  ;;  %v196_v14 = vld [vmem:[#allocation8 + $0xc8] sm:$0xff]  ;;  %v193_v15 = vld [vmem:[#allocation8 + $0xb0] sm:$0xff]  ;;  %v138_v16 = vld [vmem:[#allocation7 + $0x40] sm:$0xff] }
  0x23   :  { %230 = vmatpush.msra.mxu2 %v200_v8  ;;  %v194_v17 = vld [vmem:[#allocation8 + $0xb8] sm:$0xff]  ;;  %v191_v18 = vld [vmem:[#allocation8 + $0xa0] sm:$0xff]  ;;  %v192_v20 = vld [vmem:[#allocation8 + $0xa8] sm:$0xff] }
  0x24   :  { %153 = vmatpush.msra.mxu0 %v142_v3  ;;  %211 = vmatpush.msra.mxu1 %v197_v9  ;;  %v137_v19 = vld [vmem:[#allocation7 + $0x38] sm:$0xff]  ;;  %v189_v21 = vld [vmem:[#allocation8 + $0x90] sm:$0xff]  ;;  %v187_v24 = vld [vmem:[#allocation8 + $0x80] sm:$0xff] }
  0x25   :  { %231 = vmatpush.msra.mxu2 %v198_v11  ;;  %v136_v22 = vld [vmem:[#allocation7 + $0x30] sm:$0xff]  ;;  %v190_v23 = vld [vmem:[#allocation8 + $0x98] sm:$0xff]  ;;  %v135_v25 = vld [vmem:[#allocation7 + $0x28] sm:$0xff] }
  0x26   :  { %154 = vmatpush.msra.mxu0 %v141_v4  ;;  %212 = vmatpush.msra.mxu1 %v195_v12  ;;  %v188_v26 = vld [vmem:[#allocation8 + $0x88] sm:$0xff]  ;;  %v185_v27 = vld [vmem:[#allocation8 + $0x70] sm:$0xff]  ;;  %v134_v28 = vld [vmem:[#allocation7 + $0x20] sm:$0xff] }
  0x27   :  { %232 = vmatpush.msra.mxu2 %v196_v14  ;;  %v186_v29 = vld [vmem:[#allocation8 + $0x78] sm:$0xff]  ;;  %v183_v30 = vld [vmem:[#allocation8 + $0x60] sm:$0xff]  ;;  %v184_v32 = vld [vmem:[#allocation8 + $0x68] sm:$0xff] }
  0x28   :  { %155 = vmatpush.msra.mxu0 %v140_v10  ;;  %213 = vmatpush.msra.mxu1 %v193_v15  ;;  %v133_v31 = vld [vmem:[#allocation7 + $0x18] sm:$0xff]  ;;  %v181_v33 = vld [vmem:[#allocation8 + $0x50] sm:$0xff]  ;;  %v179_v36 = vld [vmem:[#allocation8 + $0x40] sm:$0xff] }
  0x29   :  { %233 = vmatpush.msra.mxu2 %v194_v17  ;;  %v132_v34 = vld [vmem:[#allocation7 + $0x10] sm:$0xff]  ;;  %v182_v35 = vld [vmem:[#allocation8 + $0x58] sm:$0xff]  ;;  %v131_v37 = vld [vmem:[#allocation7 + $0x8] sm:$0xff] }
  0x2a   :  { %156 = vmatpush.msra.mxu0 %v139_v13  ;;  %214 = vmatpush.msra.mxu1 %v191_v18  ;;  %v180_v38 = vld [vmem:[#allocation8 + $0x48] sm:$0xff]  ;;  %v177_v39 = vld [vmem:[#allocation8 + $0x30] sm:$0xff]  ;;  %v130_v40 = vld [vmem:[#allocation7] sm:$0xff] }
  0x2b   :  { %234 = vmatpush.msra.mxu2 %v192_v20  ;;  %v178_v41 = vld [vmem:[#allocation8 + $0x38] sm:$0xff]  ;;  %v129_v42 = vld [vmem:[#allocation2] sm:$0xff]  ;;  %v175_v43 = vld [vmem:[#allocation8 + $0x20] sm:$0xff] }
  0x2c   :  { %157 = vmatpush.msra.mxu0 %v138_v16  ;;  %215 = vmatpush.msra.mxu1 %v189_v21  ;;  %v176_v44 = vld [vmem:[#allocation8 + $0x28] sm:$0xff]  ;;  %v173_v45 = vld [vmem:[#allocation8 + $0x10] sm:$0xff]  ;;  %v174_v46 = vld [vmem:[#allocation8 + $0x18] sm:$0xff] }
  0x2d   :  { %235 = vmatpush.msra.mxu2 %v190_v23  ;;  %v171_v47 = vld [vmem:[#allocation8] sm:$0xff]  ;;  %v172_v48 = vld [vmem:[#allocation8 + $0x8] sm:$0xff]  ;;  %v270_v49 = vld [vmem:[#allocation10 + $0x78] sm:$0xff] }
  0x2e   :  { %158 = vmatpush.msra.mxu0 %v137_v19  ;;  %216 = vmatpush.msra.mxu1 %v187_v24  ;;  %v269_v50 = vld [vmem:[#allocation10 + $0x70] sm:$0xff]  ;;  %v268_v51 = vld [vmem:[#allocation10 + $0x68] sm:$0xff]  ;;  %v267_v52 = vld [vmem:[#allocation10 + $0x60] sm:$0xff] }
  0x2f   :  { %236 = vmatpush.msra.mxu2 %v188_v26  ;;  %275 = vmatpush.msra.mxu3 %v270_v49  ;;  %v407_v53 = vld [vmem:[%s731_s3] ss:$0 sm:$0xff]  ;;  %v266_v57 = vld [vmem:[#allocation10 + $0x58] sm:$0xff]  ;;  %v264_v59 = vld [vmem:[#allocation10 + $0x48] sm:$0xff] }
  0x30   :  { %159 = vmatpush.msra.mxu0 %v136_v22  ;;  %217 = vmatpush.msra.mxu1 %v185_v27  ;;  %v265_v58 = vld [vmem:[#allocation10 + $0x50] sm:$0xff]  ;;  %v263_v60 = vld [vmem:[#allocation10 + $0x40] sm:$0xff]  ;;  %v262_v61 = vld [vmem:[#allocation10 + $0x38] sm:$0xff] }
  0x31   :  { %237 = vmatpush.msra.mxu2 %v186_v29  ;;  %276 = vmatpush.msra.mxu3 %v269_v50  ;;  %v261_v62 = vld [vmem:[#allocation10 + $0x30] sm:$0xff]  ;;  %v260_v63 = vld [vmem:[#allocation10 + $0x28] sm:$0xff]  ;;  %v259_v0 = vld [vmem:[#allocation10 + $0x20] sm:$0xff] }
  0x32   :  { %160 = vmatpush.msra.mxu0 %v135_v25  ;;  %218 = vmatpush.msra.mxu1 %v183_v30  ;;  %v258_v1 = vld [vmem:[#allocation10 + $0x18] sm:$0xff]  ;;  %v257_v2 = vld [vmem:[#allocation10 + $0x10] sm:$0xff]  ;;  %v256_v3 = vld [vmem:[#allocation10 + $0x8] sm:$0xff] }
  0x33   :  { %238 = vmatpush.msra.mxu2 %v184_v32  ;;  %277 = vmatpush.msra.mxu3 %v268_v51  ;;  %v255_v4 = vld [vmem:[#allocation10] sm:$0xff]  ;;  %v311_v5 = vld [vmem:[#allocation11 + $0x78] sm:$0xff]  ;;  %v310_v6 = vld [vmem:[#allocation11 + $0x70] sm:$0xff] }
  0x34   :  { %161 = vmatpush.msra.mxu0 %v134_v28  ;;  %219 = vmatpush.msra.mxu1 %v181_v33  ;;  %v203_v7 = vld [vmem:[%s733_s5] sm:$0x3]  ;;  %v309_v8 = vld [vmem:[#allocation11 + $0x68] sm:$0xff]  ;;  %v308_v9 = vld [vmem:[#allocation11 + $0x60] sm:$0xff] }
  0x35   :  { %239 = vmatpush.msra.mxu2 %v182_v35  ;;  %278 = vmatpush.msra.mxu3 %v267_v52  ;;  %v205_v10 = vperm.slane %v203_v7, 0  ;;  %v307_v11 = vld [vmem:[#allocation11 + $0x58] sm:$0xff]  ;;  %v306_v13 = vld [vmem:[#allocation11 + $0x50] sm:$0xff]  ;;  %v305_v15 = vld [vmem:[#allocation11 + $0x48] sm:$0xff]  ;;  %v206_v16 = vperm.slane %v203_v7, 1 }
  0x36   :  { %162 = vmatpush.msra.mxu0 %v133_v31  ;;  %220 = vmatpush.msra.mxu1 %v179_v36  ;;  %v304_v17 = vld [vmem:[#allocation11 + $0x40] sm:$0xff]  ;;  %v303_v19 = vld [vmem:[#allocation11 + $0x38] sm:$0xff]  ;;  %v302_v21 = vld [vmem:[#allocation11 + $0x30] sm:$0xff] }
  0x37   :  { %240 = vmatpush.msra.mxu2 %v180_v38  ;;  %279 = vmatpush.msra.mxu3 %v266_v57  ;;  %v301_v23 = vld [vmem:[#allocation11 + $0x28] sm:$0xff]  ;;  %v300_v25 = vld [vmem:[#allocation11 + $0x20] sm:$0xff]  ;;  %v299_v26 = vld [vmem:[#allocation11 + $0x18] sm:$0xff] }
  0x38   :  { %163 = vmatpush.msra.mxu0 %v132_v34  ;;  %221 = vmatpush.msra.mxu1 %v177_v39  ;;  %v249_v27 = vld [vmem:[#allocation5] sm:$0xff]  ;;  %v298_v31 = vld [vmem:[#allocation11 + $0x10] sm:$0xff]  ;;  %v297_v32 = vld [vmem:[#allocation11 + $0x8] sm:$0xff] }
  0x39   :  { %241 = vmatpush.msra.mxu2 %v178_v41  ;;  %280 = vmatpush.msra.mxu3 %v265_v58  ;;  %v296_v33 = vld [vmem:[#allocation11] sm:$0xff]  ;;  %v408_v34 = vld [vmem:[%s735_s7] ss:$0 sm:$0xff]  ;;  %s631_s7 = smov [#allocation13]  }
  0x3a   :  { %164 = vmatpush.msra.mxu0 %v131_v37  ;;  %222 = vmatpush.msra.mxu1 %v175_v43  ;;  %v409_v38 = vld [vmem:[%s737_s9] ss:$0 sm:$0xff]  ;;  %s363_s11 = sshll.u32 %s631_s7, 4  ;;  %s365_s9 = sshll.u32 %s738_s10, 4  ;;  %s364_s11 = int_to_ptr.vmem [resolvable:$true] %s363_s11  ;;  %s366_s9 = int_to_ptr.hbm [resolvable:$true] %s365_s9 }
  0x3b   :  { %242 = vmatpush.msra.mxu2 %v176_v44  ;;  %281 = vmatpush.msra.mxu3 %v264_v59 }
  0x3c   :  { %165 = vmatpush.msra.mxu0 %v130_v40  ;;  %223 = vmatpush.msra.mxu1 %v173_v45 }
  0x3d   :  { %166 = vmatmul.f32.vlgmr.msra.gmra.mxu0 %v129_v42  ;;  %243 = vmatpush.msra.mxu2 %v174_v46 }
  0x3e   :  { %224 = vmatpush.msra.mxu1 %v171_v47  ;;  %282 = vmatpush.msra.mxu3 %v263_v60 }
  0x3f   :  { %244 = vmatpush.msra.mxu2 %v172_v48  ;;  %316 = vmatpush.msrb.mxu0 %v311_v5 }
  0x40   :  { %283 = vmatpush.msra.mxu3 %v262_v61 }
  0x41   :  { %317 = vmatpush.msrb.mxu0 %v310_v6 }
  0x42   :  { %284 = vmatpush.msra.mxu3 %v261_v62 }
  0x43   :  { %318 = vmatpush.msrb.mxu0 %v309_v8 }
  0x44   :  { %285 = vmatpush.msra.mxu3 %v260_v63 }
  0x45   :  { %319 = vmatpush.msrb.mxu0 %v308_v9 }
  0x46   :  { %286 = vmatpush.msra.mxu3 %v259_v0 }
  0x47   :  { %320 = vmatpush.msrb.mxu0 %v307_v11 }
  0x48   :  { %287 = vmatpush.msra.mxu3 %v258_v1 }
  0x49   :  { %321 = vmatpush.msrb.mxu0 %v306_v13 }
  0x4a   :  { %288 = vmatpush.msra.mxu3 %v257_v2 }
  0x4b   :  { %322 = vmatpush.msrb.mxu0 %v305_v15 }
  0x4c   :  { %289 = vmatpush.msra.mxu3 %v256_v3 }
  0x4d   :  { %323 = vmatpush.msrb.mxu0 %v304_v17 }
  0x4e   :  { %290 = vmatpush.msra.mxu3 %v255_v4 }
  0x4f   :  { %324 = vmatpush.msrb.mxu0 %v303_v19 }
  0x51   :  { %325 = vmatpush.msrb.mxu0 %v302_v21 }
  0x53   :  { %326 = vmatpush.msrb.mxu0 %v301_v23 }
  0x55   :  { %327 = vmatpush.msrb.mxu0 %v300_v25 }
  0x57   :  { %328 = vmatpush.msrb.mxu0 %v299_v26 }
  0x59   :  { %329 = vmatpush.msrb.mxu0 %v298_v31 }
  0x5b   :  { %330 = vmatpush.msrb.mxu0 %v297_v32 }
  0x5d   :  { %331 = vmatpush.msrb.mxu0 %v296_v33 }
  0xba   :  { %v167_v54 = vpop.f32.mrf.mxu0 }
  0xbb   :  { %v168_v55 = vadd.f32 %v407_v53, %v167_v54 }
  0xbd   :  { %v170_v56 = vmax.f32 %v168_v55, 0.0 }
  0xbf   :  { %225 = vmatmul.f32.vlgmr.msra.gmra.mxu1 %v170_v56  ;;  %245 = vmatmul.f32.vlgmr.msra.gmra.mxu2 %v170_v56 }
 0x13c   :  { %v226_v12 = vpop.f32.mrf.mxu1 }
 0x13d   :  { %v227_v14 = vadd.f32 %v226_v12, %v205_v10 }
 0x13f   :  { %356 = vst [vmem:[#allocation14] sm:$0xff] %v227_v14 }
 0x142   :  { %v246_v18 = vpop.f32.mrf.mxu2 }
 0x143   :  { %v247_v20 = vadd.f32 %v246_v18, %v206_v16 }
 0x145   :  { %v250_v22 = vmul.f32 0.5, %v247_v20  ;;  %357 = vst [vmem:[#allocation14 + $0x8] sm:$0xff] %v247_v20 }
 0x146   :  { %379 = dma.vmem_to_hbm [thread:$0]  %s375_s1, 256, %s377_s14, [#allocation15]  }
 0x147   :  { %v251_v24 = vmul.f32 1.442695, %v250_v22 }
 0x149   :  { %410 = vpow2.f32 %v251_v24 }
 0x14f   :  { %v411_v28 = vpop.eup %410 }
 0x150   :  { %v253_v29 = vmul.f32 %v411_v28, %v249_v27 }
 0x152   :  { %v254_v30 = vadd.f32 %v253_v29, %v227_v14 }
 0x154   :  { %291 = vmatmul.f32.vlgmr.msra.gmra.mxu3 %v254_v30 }
 0x1d7   :  { %v292_v35 = vpop.f32.mrf.mxu3 }
 0x1d8   :  { %v293_v36 = vadd.f32 %v408_v34, %v292_v35 }
 0x1da   :  { %v295_v37 = vmax.f32 %v293_v36, 0.0 }
 0x1dc   :  { %332 = vmatmul.f32.vlgmr.msrb.gmra.mxu0 %v295_v37 }
 0x259   :  { %v333_v39 = vpop.f32.mrf.mxu0 }
 0x25a   :  { %v334_v40 = vadd.f32 %v409_v38, %v333_v39 }
 0x25c   :  { %v394_v41 = vmul.f32 -1.442695, %v334_v40 }
 0x25e   :  { %412 = vpow2.f32 %v394_v41 }
 0x264   :  { %v413_v42 = vpop.eup %412 }
 0x265   :  { %v339_v43 = vadd.f32 1.0, %v413_v42 }
 0x267   :  { %414 = vrcp.f32 %v339_v43  ;;  %v351_v47 = vand.u32 2147483648, %v339_v43  ;;  %v349_v49 = vand.u32 2147483647, %v339_v43  ;;  %vm345_vm1 = vweird.f32 %v339_v43 }
 0x269   :  { %v352_v51 = vor.u32 1.1754944e-38, %v351_v47  ;;  %vm350_vm3 = vcmp.eq.f32.partialorder %v349_v49, 8.507059e+37 }
 0x26d   :  { %v415_v44 = vpop.eup %414 }
 0x26e   :  { %v341_v45 = vmul.f32 %v415_v44, %v339_v43  ;;  %vm346_vm0 = vweird.f32 %v415_v44 }
 0x26f   :  { %vm347_vm2 = vmor %vm345_vm1, %vm346_vm0 }
 0x270   :  { %v342_v46 = vsub.f32 1.0, %v341_v45 }
 0x272   :  { %v343_v48 = vmul.f32 %v415_v44, %v342_v46 }
 0x274   :  { %v344_v50 = vadd.f32 %v415_v44, %v343_v48 }
 0x276   :  { %v348_v52 = vsel %vm347_vm2, %v415_v44, %v344_v50 }
 0x277   :  { %v353_v53 = vsel %vm350_vm3, %v352_v51, %v348_v52 }
 0x278   :  { %355 = vst [vmem:[#allocation13] sm:$0xff] %v353_v53 }
 0x279   :  { %368 = dma.vmem_to_hbm [thread:$0]  %s364_s11, 128, %s366_s9, [#allocation4]  }
 0x27a   :  { %616 = dma.done.wait [#allocation4], 128  }
 0x27b   :  { %617 = vsyncadd [#allocation4], 4294967168 }
 0x27c   :  { %618 = dma.done.wait [#allocation15], 256  }
 0x27d   :  { %619 = vsyncadd [#allocation15], 4294967040 }
 0x27e   :  { %388 = vsyncpa [#allocation3], 1 }
 0x27f   :  { %389 = vsyncpa [#allocation6], 1 }
 0x280   :  { %390 = vsyncpa [#allocation9], 1 }
 0x281   :  { %391 = vsyncpa [#allocation12], 1 }
 0x282   :  { %392 = vsyncpa [#allocation4], 1 }
 0x283   :  { %393 = vsyncpa [#allocation15], 1 }

</bundles_post_ra>
